<compile_context>
chip_gen: v6e
topology: v6e:2x2x1
jax: 0.10.0
libtpu: 0.0.40
codegen_flags: <defaults>
</compile_context>

<pallas_src>
import functools

import jax
import jax.numpy as jnp
from jax.experimental import pallas as pl
from jax.experimental.pallas import tpu as pltpu


LN_EPS = 1e-5  # nn.LayerNorm default


def classifier_kernel(x_ref, w1_ref, b1_ref, gamma_ref, beta_ref, w2_ref, b2_ref,
                      out_ref):
    # --- Linear 1: (bB, d_inp) @ (d_inp, d_hid) + b1 ---
    # Keep x/W1 in their native dtype (bf16 feeds the MXU directly on v6e/v7x);
    # accumulate in f32.
    h = (jnp.dot(x_ref[...], w1_ref[...], preferred_element_type=jnp.float32)
         + b1_ref[...].astype(jnp.float32))

    # --- Tanh (EUP) ---
    h = jnp.tanh(h)

    # --- LayerNorm over d_hid: single-pass statistics (sum & sum-of-squares) ---
    d_hid = h.shape[-1]
    inv_d = 1.0 / d_hid
    mean = jnp.sum(h, axis=-1, keepdims=True) * inv_d
    mean_sq = jnp.sum(h * h, axis=-1, keepdims=True) * inv_d
    var = mean_sq - mean * mean
    hn = (h - mean) * jax.lax.rsqrt(var + LN_EPS)
    hn = hn * gamma_ref[...].astype(jnp.float32) + beta_ref[...].astype(jnp.float32)

    # --- Dropout: inference mode => identity ---
    # TODO(synk): training-mode dropout (Bernoulli mask via pltpu.prng_*) not emitted.

    # --- Linear 2: (bB, d_hid) @ (d_hid, n_pad) + b2 (lane-padded N) ---
    hn = hn.astype(w2_ref.dtype)
    out_ref[...] = (jnp.dot(hn, w2_ref[...], preferred_element_type=jnp.float32)
                    + b2_ref[...].astype(jnp.float32)).astype(out_ref.dtype)


def _round_up(x, m):
    return ((x + m - 1) // m) * m


@functools.partial(jax.jit, static_argnames=("block_b",))
def classifier_forward(x, w1, b1, gamma, beta, w2, b2, *, block_b=128):
    B, d_inp = x.shape
    d_hid = w1.shape[1]
    n_classes = w2.shape[1]

    # Lane-pad the output dimension to a multiple of 128 so the final store is
    # unmasked and the second matmul uses a full MXU N tile. Padding is a tiny
    # constant-sized op on the (d_hid, n_classes) weight only.
    n_pad = _round_up(max(n_classes, 128), 128)
    if n_pad != n_classes:
        w2p = jnp.pad(w2, ((0, 0), (0, n_pad - n_classes)))
        b2p = jnp.pad(b2, ((0, 0), (0, n_pad - n_classes)))
    else:
        w2p, b2p = w2, b2

    # Clamp the batch tile to B (small-batch case); keep it a multiple of 8 when
    # tiling, otherwise use the full batch as a single block.
    bb = min(block_b, B)
    if B % bb != 0 and bb % 8 != 0:
        bb = B  # full-array block is always legal

    grid = (pl.cdiv(B, bb),)

    bytes_in = (x.size * x.dtype.itemsize + w1.size * w1.dtype.itemsize
                + b1.size * b1.dtype.itemsize + gamma.size * gamma.dtype.itemsize
                + beta.size * beta.dtype.itemsize + w2p.size * w2p.dtype.itemsize
                + b2p.size * b2p.dtype.itemsize)
    bytes_out = B * n_pad * 4
    cost = pl.CostEstimate(
        flops=2 * B * d_hid * (d_inp + n_pad),
        transcendentals=B * d_hid,        # tanh + rsqrt dominated by tanh
        bytes_accessed=bytes_in + bytes_out,
    )

    out_padded = pl.pallas_call(
        classifier_kernel,
        out_shape=jax.ShapeDtypeStruct((B, n_pad), jnp.float32),
        grid_spec=pltpu.PrefetchScalarGridSpec(
            num_scalar_prefetch=0,
            grid=grid,
            in_specs=[
                pl.BlockSpec((bb, d_inp), lambda i: (i, 0)),         # x tile
                pl.BlockSpec((d_inp, d_hid), lambda i: (0, 0)),      # W1 (resident)
                pl.BlockSpec((1, d_hid), lambda i: (0, 0)),          # b1
                pl.BlockSpec((1, d_hid), lambda i: (0, 0)),          # LN gamma
                pl.BlockSpec((1, d_hid), lambda i: (0, 0)),          # LN beta
                pl.BlockSpec((d_hid, n_pad), lambda i: (0, 0)),      # W2 (resident, padded)
                pl.BlockSpec((1, n_pad), lambda i: (0, 0)),          # b2 (padded)
            ],
            out_specs=pl.BlockSpec((bb, n_pad), lambda i: (i, 0)),   # lane-dense output
        ),
        compiler_params=pltpu.CompilerParams(
            dimension_semantics=("parallel",)),
        cost_estimate=cost,
    )(x, w1, b1, gamma, beta, w2p, b2p)

    return out_padded[:, :n_classes]


def init_params(key, d_inp, d_hid, n_classes, dtype=jnp.float32):
    """Deterministic init mirroring nn.Linear default (uniform +/- 1/sqrt(fan_in))."""
    k1, k2, k3, k4 = jax.random.split(key, 4)
    lim1 = 1.0 / jnp.sqrt(d_inp)
    lim2 = 1.0 / jnp.sqrt(d_hid)
    w1 = jax.random.uniform(k1, (d_inp, d_hid), jnp.float32, -lim1, lim1).astype(dtype)
    b1 = jax.random.uniform(k2, (1, d_hid), jnp.float32, -lim1, lim1).astype(dtype)
    gamma = jnp.ones((1, d_hid), dtype)   # nn.LayerNorm default weight
    beta = jnp.zeros((1, d_hid), dtype)   # nn.LayerNorm default bias
    w2 = jax.random.uniform(k3, (d_hid, n_classes), jnp.float32, -lim2, lim2).astype(dtype)
    b2 = jax.random.uniform(k4, (1, n_classes), jnp.float32, -lim2, lim2).astype(dtype)
    return w1, b1, gamma, beta, w2, b2


def reference_forward(x, w1, b1, gamma, beta, w2, b2):
    xf, w1f, b1f = x.astype(jnp.float32), w1.astype(jnp.float32), b1.astype(jnp.float32)
    w2f, b2f = w2.astype(jnp.float32), b2.astype(jnp.float32)
    h = jnp.tanh(xf @ w1f + b1f)
    mean = jnp.mean(h, axis=-1, keepdims=True)
    var = jnp.mean((h - mean) ** 2, axis=-1, keepdims=True)
    hn = (h - mean) * jax.lax.rsqrt(var + LN_EPS)
    hn = hn * gamma.astype(jnp.float32) + beta.astype(jnp.float32)
    return hn @ w2f + b2f


if __name__ == "__main__":
    # Small shapes consistent with the module: seq_emb (B, d_inp), d_hid=512 default.
    B, d_inp, d_hid, n_classes = 8, 32, 512, 8

    key = jax.random.PRNGKey(0)
    kx, kp, kx2 = jax.random.split(key, 3)
    x = jax.random.normal(kx, (B, d_inp), jnp.float32)
    params = init_params(kp, d_inp, d_hid, n_classes)

    logits = classifier_forward(x, *params)
    logits = jax.block_until_ready(logits)
    ref = reference_forward(x, *params)
    assert logits.shape == (B, n_classes)
    assert jnp.allclose(logits, ref, atol=1e-4, rtol=1e-4), "mismatch vs reference (small)"

    # Larger batch exercises the tiled (block_b=128) path with a multi-step grid.
    B2 = 256
    x2 = jax.random.normal(kx2, (B2, d_inp), jnp.float32)
    logits2 = jax.block_until_ready(classifier_forward(x2, *params, block_b=128))
    ref2 = reference_forward(x2, *params)
    assert logits2.shape == (B2, n_classes)
    assert jnp.allclose(logits2, ref2, atol=1e-4, rtol=1e-4), "mismatch vs reference (tiled)"

    print("KERNEL_OK")
</pallas_src>

<mosaic_0001>
module attributes {stable_mosaic.version = 11 : i64} {
  func.func @classifier_kernel(%arg0: i32, %arg1: memref<8x32xf32, #tpu.memory_space<vmem>>, %arg2: memref<32x512xf32, #tpu.memory_space<vmem>>, %arg3: memref<1x512xf32, #tpu.memory_space<vmem>>, %arg4: memref<1x512xf32, #tpu.memory_space<vmem>>, %arg5: memref<1x512xf32, #tpu.memory_space<vmem>>, %arg6: memref<512x128xf32, #tpu.memory_space<vmem>>, %arg7: memref<1x128xf32, #tpu.memory_space<vmem>>, %arg8: memref<8x128xf32, #tpu.memory_space<vmem>>) attributes {dimension_semantics = [#tpu.dimension_semantics<parallel>], iteration_bounds = array<i64: 1>, scalar_prefetch = 0 : i64, scratch_operands = 0 : i64, tpu.core_type = #tpu.core_type<tc>, window_params = [{transform_indices = @transform_0, window_bounds = array<i64: 8, 32>}, {pipeline_mode = #tpu.pipeline_mode<synchronous>, transform_indices = @transform_1, window_bounds = array<i64: 32, 512>}, {pipeline_mode = #tpu.pipeline_mode<synchronous>, transform_indices = @transform_2, window_bounds = array<i64: 1, 512>}, {pipeline_mode = #tpu.pipeline_mode<synchronous>, transform_indices = @transform_3, window_bounds = array<i64: 1, 512>}, {pipeline_mode = #tpu.pipeline_mode<synchronous>, transform_indices = @transform_4, window_bounds = array<i64: 1, 512>}, {pipeline_mode = #tpu.pipeline_mode<synchronous>, transform_indices = @transform_5, window_bounds = array<i64: 512, 128>}, {pipeline_mode = #tpu.pipeline_mode<synchronous>, transform_indices = @transform_6, window_bounds = array<i64: 1, 128>}, {transform_indices = @transform_7, window_bounds = array<i64: 8, 128>}]} {
    %c0 = arith.constant 0 : index
    %c0_0 = arith.constant 0 : index
    %0 = vector.load %arg1[%c0, %c0_0] : memref<8x32xf32, #tpu.memory_space<vmem>>, vector<8x32xf32>
    %c0_1 = arith.constant 0 : index
    %c0_2 = arith.constant 0 : index
    %1 = vector.load %arg2[%c0_1, %c0_2] : memref<32x512xf32, #tpu.memory_space<vmem>>, vector<32x512xf32>
    %cst = arith.constant dense<0.000000e+00> : vector<8x512xf32>
    %2 = tpu.matmul %0, %1, %cst {dimension_numbers = #tpu.dot_dimension_numbers<[1], [0], [0], [1], [0, 0, 1, 1], [], []>} : vector<8x32xf32>, vector<32x512xf32>, vector<8x512xf32> -> vector<8x512xf32>
    %c0_3 = arith.constant 0 : index
    %c0_4 = arith.constant 0 : index
    %3 = vector.load %arg3[%c0_3, %c0_4] : memref<1x512xf32, #tpu.memory_space<vmem>>, vector<1x512xf32>
    %4 = vector.broadcast %3 : vector<1x512xf32> to vector<8x512xf32>
    %5 = arith.addf %2, %4 : vector<8x512xf32>
    %6 = math.tanh %5 : vector<8x512xf32>
    %cst_5 = arith.constant dense<0.000000e+00> : vector<8xf32>
    %7 = vector.multi_reduction <add>, %6, %cst_5 [1] : vector<8x512xf32> to vector<8xf32>
    %8 = vector.shape_cast %7 : vector<8xf32> to vector<8x1xf32>
    %cst_6 = arith.constant 0.001953125 : f32
    %9 = vector.broadcast %cst_6 : f32 to vector<8x1xf32>
    %10 = arith.mulf %8, %9 : vector<8x1xf32>
    %11 = arith.mulf %6, %6 : vector<8x512xf32>
    %cst_7 = arith.constant dense<0.000000e+00> : vector<8xf32>
    %12 = vector.multi_reduction <add>, %11, %cst_7 [1] : vector<8x512xf32> to vector<8xf32>
    %13 = vector.shape_cast %12 : vector<8xf32> to vector<8x1xf32>
    %cst_8 = arith.constant 0.001953125 : f32
    %14 = vector.broadcast %cst_8 : f32 to vector<8x1xf32>
    %15 = arith.mulf %13, %14 : vector<8x1xf32>
    %16 = arith.mulf %10, %10 : vector<8x1xf32>
    %17 = arith.subf %15, %16 : vector<8x1xf32>
    %18 = vector.broadcast %10 : vector<8x1xf32> to vector<8x512xf32>
    %19 = arith.subf %6, %18 : vector<8x512xf32>
    %cst_9 = arith.constant 9.99999974E-6 : f32
    %20 = vector.broadcast %cst_9 : f32 to vector<8x1xf32>
    %21 = arith.addf %17, %20 : vector<8x1xf32>
    %22 = math.rsqrt %21 : vector<8x1xf32>
    %23 = vector.broadcast %22 : vector<8x1xf32> to vector<8x512xf32>
    %24 = arith.mulf %19, %23 : vector<8x512xf32>
    %c0_10 = arith.constant 0 : index
    %c0_11 = arith.constant 0 : index
    %25 = vector.load %arg4[%c0_10, %c0_11] : memref<1x512xf32, #tpu.memory_space<vmem>>, vector<1x512xf32>
    %26 = vector.broadcast %25 : vector<1x512xf32> to vector<8x512xf32>
    %27 = arith.mulf %24, %26 : vector<8x512xf32>
    %c0_12 = arith.constant 0 : index
    %c0_13 = arith.constant 0 : index
    %28 = vector.load %arg5[%c0_12, %c0_13] : memref<1x512xf32, #tpu.memory_space<vmem>>, vector<1x512xf32>
    %29 = vector.broadcast %28 : vector<1x512xf32> to vector<8x512xf32>
    %30 = arith.addf %27, %29 : vector<8x512xf32>
    %c0_14 = arith.constant 0 : index
    %c0_15 = arith.constant 0 : index
    %31 = vector.load %arg6[%c0_14, %c0_15] : memref<512x128xf32, #tpu.memory_space<vmem>>, vector<512x128xf32>
    %cst_16 = arith.constant dense<0.000000e+00> : vector<8x128xf32>
    %32 = tpu.matmul %30, %31, %cst_16 {dimension_numbers = #tpu.dot_dimension_numbers<[1], [0], [0], [1], [0, 0, 1, 1], [], []>} : vector<8x512xf32>, vector<512x128xf32>, vector<8x128xf32> -> vector<8x128xf32>
    %c0_17 = arith.constant 0 : index
    %c0_18 = arith.constant 0 : index
    %33 = vector.load %arg7[%c0_17, %c0_18] : memref<1x128xf32, #tpu.memory_space<vmem>>, vector<1x128xf32>
    %34 = vector.broadcast %33 : vector<1x128xf32> to vector<8x128xf32>
    %35 = arith.addf %32, %34 : vector<8x128xf32>
    %c0_19 = arith.constant 0 : index
    %c0_20 = arith.constant 0 : index
    %36 = vector.load %arg8[%c0_19, %c0_20] : memref<8x128xf32, #tpu.memory_space<vmem>>, vector<8x128xf32>
    tpu.vector_store %arg8[%c0_19, %c0_20], %35 {strides = array<i32>} : memref<8x128xf32, #tpu.memory_space<vmem>>, vector<8x128xf32>,
    return
  }
  func.func @transform_0(%arg0: i32) -> (i32, i32) {
    %c0_i32 = arith.constant 0 : i32
    %c0_i32_0 = arith.constant 0 : i32
    return %arg0, %c0_i32 : i32, i32
  }
  func.func @transform_1(%arg0: i32) -> (i32, i32) {
    %c0_i32 = arith.constant 0 : i32
    %c0_i32_0 = arith.constant 0 : i32
    %c0_i32_1 = arith.constant 0 : i32
    return %c0_i32, %c0_i32_0 : i32, i32
  }
  func.func @transform_2(%arg0: i32) -> (i32, i32) {
    %c0_i32 = arith.constant 0 : i32
    %c0_i32_0 = arith.constant 0 : i32
    %c0_i32_1 = arith.constant 0 : i32
    return %c0_i32, %c0_i32_0 : i32, i32
  }
  func.func @transform_3(%arg0: i32) -> (i32, i32) {
    %c0_i32 = arith.constant 0 : i32
    %c0_i32_0 = arith.constant 0 : i32
    %c0_i32_1 = arith.constant 0 : i32
    return %c0_i32, %c0_i32_0 : i32, i32
  }
  func.func @transform_4(%arg0: i32) -> (i32, i32) {
    %c0_i32 = arith.constant 0 : i32
    %c0_i32_0 = arith.constant 0 : i32
    %c0_i32_1 = arith.constant 0 : i32
    return %c0_i32, %c0_i32_0 : i32, i32
  }
  func.func @transform_5(%arg0: i32) -> (i32, i32) {
    %c0_i32 = arith.constant 0 : i32
    %c0_i32_0 = arith.constant 0 : i32
    %c0_i32_1 = arith.constant 0 : i32
    return %c0_i32, %c0_i32_0 : i32, i32
  }
  func.func @transform_6(%arg0: i32) -> (i32, i32) {
    %c0_i32 = arith.constant 0 : i32
    %c0_i32_0 = arith.constant 0 : i32
    %c0_i32_1 = arith.constant 0 : i32
    return %c0_i32, %c0_i32_0 : i32, i32
  }
  func.func @transform_7(%arg0: i32) -> (i32, i32) {
    %c0_i32 = arith.constant 0 : i32
    %c0_i32_0 = arith.constant 0 : i32
    return %arg0, %c0_i32 : i32, i32
  }
}

</mosaic_0001>

<bundles_post_ra>
// kernel: classifier_forward.1
= control target key start
LH: loop header
LB: loop body
LE: loop exit
PB: predicated region body
PF: predicated region fallthrough
CT: control target
= control target key end

     0   :  { %v629_v6 = vmov 0.0   ;;  %vm66_vm0 = vcmask 261120   ;;  %s973_s0 = inlined_call_operand.vmem [shape: f32[8,32], index: 0, kind: input, shape index: {}]   ;;  %s974_s1 = inlined_call_operand.vmem [shape: f32[32,512], index: 1, kind: input, shape index: {}]   ;;  %s975_s2 = inlined_call_operand.vmem [shape: f32[1,512], index: 2, kind: input, shape index: {}]   ;;  %s976_s3 = inlined_call_operand.vmem [shape: f32[1,512], index: 3, kind: input, shape index: {}]   ;;  %s977_s4 = inlined_call_operand.vmem [shape: f32[1,512], index: 4, kind: input, shape index: {}]   ;;  %s978_s5 = inlined_call_operand.vmem [shape: f32[512,128], index: 5, kind: input, shape index: {}]   ;;  %s979_s6 = inlined_call_operand.vmem [shape: f32[1,128], index: 6, kind: input, shape index: {}]   ;;  %s980_s7 = inlined_call_operand.hbm [shape: f32[8,128], index: 7, kind: output, shape index: {}]  }
   0x1   :  { %v41_v0 = vld [vmem:[%s974_s1 + $0x68] sm:$0xff]  ;;  %v40_v1 = vld [vmem:[%s974_s1 + $0x60] sm:$0xff]  ;;  %v43_v3 = vld [vmem:[%s974_s1 + $0x78] sm:$0xff]  ;;  %134 = vmatprep.mubr.f32.mxu0 %v629_v6 }
   0x2   :  { %v37_v2 = vld [vmem:[%s974_s1 + $0x48] sm:$0xff]  ;;  %94 = vmatprep.subr.mxu0 %v41_v0  ;;  %v36_v4 = vld [vmem:[%s974_s1 + $0x40] sm:$0xff]  ;;  %v42_v5 = vld [vmem:[%s974_s1 + $0x70] sm:$0xff]  ;;  %165 = vmatprep.subr.mxu1 %v43_v3 }
   0x3   :  { %95 = vmatpush1.msra.mxu0 %v40_v1  ;;  %v33_v7 = vld [vmem:[%s974_s1 + $0x28] sm:$0xff]  ;;  %v39_v8 = vld [vmem:[%s974_s1 + $0x58] sm:$0xff]  ;;  %166 = vmatpush1.msra.mxu1 %v42_v5  ;;  %v32_v9 = vld [vmem:[%s974_s1 + $0x20] sm:$0xff] }
   0x4   :  { %96 = vmatprep.subr.mxu0 %v37_v2  ;;  %v38_v10 = vld [vmem:[%s974_s1 + $0x50] sm:$0xff]  ;;  %v35_v11 = vld [vmem:[%s974_s1 + $0x38] sm:$0xff]  ;;  %167 = vmatprep.subr.mxu1 %v39_v8  ;;  %v29_v12 = vld [vmem:[%s974_s1 + $0x8] sm:$0xff] }
   0x5   :  { %97 = vmatpush1.msra.mxu0 %v36_v4  ;;  %v34_v13 = vld [vmem:[%s974_s1 + $0x30] sm:$0xff]  ;;  %168 = vmatpush1.msra.mxu1 %v38_v10  ;;  %v28_v14 = vld [vmem:[%s974_s1] sm:$0xff]  ;;  %v31_v15 = vld [vmem:[%s974_s1 + $0x18] sm:$0xff] }
   0x6   :  { %98 = vmatprep.subr.mxu0 %v33_v7  ;;  %169 = vmatprep.subr.mxu1 %v35_v11  ;;  %v27_v16 = vld [vmem:[%s973_s0] sm:$0xff]  ;;  %v30_v17 = vld [vmem:[%s974_s1 + $0x10] sm:$0xff] }
   0x7   :  { %99 = vmatpush1.msra.mxu0 %v32_v9 }
   0x8   :  { %12 = vsyncpa [#allocation3], 0  ;;  %100 = vmatprep.subr.mxu0 %v29_v12  ;;  %170 = vmatpush1.msra.mxu1 %v34_v13  ;;  %v327_v18 = vld [vmem:[%s978_s5 + $0xf8] sm:$0xff]  ;;  %v46_v20 = vlaneseq  ;;  %v44_v23 = vld [vmem:[%s975_s2] sm:$0xf] }
   0x9   :  { %101 = vmatpush1.msra.mxu0 %v28_v14  ;;  %171 = vmatprep.subr.mxu1 %v31_v15  ;;  %v359_v19 = vld [vmem:[%s978_s5 + $0x1f8] sm:$0xff]  ;;  %v326_v55 = vld [vmem:[%s978_s5 + $0xf0] sm:$0xff]  ;;  %v325_v59 = vld [vmem:[%s978_s5 + $0xe8] sm:$0xff] }
   0xa   :  { %522 = vmatmul.mubr.msk.f32.vlgmr.msra.gmra.mxu0 %vm66_vm0, %v27_v16  ;;  %172 = vmatpush1.msra.mxu1 %v30_v17  ;;  %v47_v21 = vshrl.u32 %v46_v20, 7  ;;  %v311_v53 = vld [vmem:[%s978_s5 + $0x78] sm:$0xff]  ;;  %v358_v56 = vld [vmem:[%s978_s5 + $0x1f0] sm:$0xff]  ;;  %v357_v60 = vld [vmem:[%s978_s5 + $0x1e8] sm:$0xff] }
   0xb   :  { %205 = vmatprep.mubr.f32.mxu1 %v629_v6  ;;  %525 = vmatprep.subr.mxu0 %v327_v18  ;;  %v343_v54 = vld [vmem:[%s978_s5 + $0x178] sm:$0xff]  ;;  %v310_v57 = vld [vmem:[%s978_s5 + $0x70] sm:$0xff]  ;;  %v309_v61 = vld [vmem:[%s978_s5 + $0x68] sm:$0xff] }
   0xc   :  { %523 = vmatmul.mubr.msk.f32.vlgmr.msra.gmra.mxu1 %vm66_vm0, %v27_v16  ;;  %560 = vmatprep.subr.mxu1 %v359_v19  ;;  %v728_v22 = vsub.s32 0, %v47_v21  ;;  %v733_v24 = vsub.s32 1, %v47_v21  ;;  %v735_v25 = vsub.s32 2, %v47_v21  ;;  %v738_v27 = vsub.s32 3, %v47_v21  ;;  %v342_v58 = vld [vmem:[%s978_s5 + $0x170] sm:$0xff]  ;;  %v341_v62 = vld [vmem:[%s978_s5 + $0x168] sm:$0xff] }
   0xd   :  { %526 = vmatpush3.msra.mxu0 %v311_v53  ;;  %561 = vmatpush3.msra.mxu1 %v343_v54  ;;  %v324_v63 = vld [vmem:[%s978_s5 + $0xe0] sm:$0xff]  ;;  %v323_v3 = vld [vmem:[%s978_s5 + $0xd8] sm:$0xff]  ;;  %v322_v7 = vld [vmem:[%s978_s5 + $0xd0] sm:$0xff] }
   0xe   :  { %v49_v26 = vrot.slane %v44_v23, %v728_v22  ;;  %v53_v28 = vrot.slane %v44_v23, %v733_v24  ;;  %v57_v29 = vrot.slane %v44_v23, %v735_v25  ;;  %v61_v32 = vrot.slane %v44_v23, %v738_v27  ;;  %527 = vmatprep.subr.mxu0 %v326_v55  ;;  %v356_v0 = vld [vmem:[%s978_s5 + $0x1e0] sm:$0xff]  ;;  %v355_v4 = vld [vmem:[%s978_s5 + $0x1d8] sm:$0xff]  ;;  %v354_v8 = vld [vmem:[%s978_s5 + $0x1d0] sm:$0xff] }
   0xf   :  { %562 = vmatprep.subr.mxu1 %v358_v56  ;;  %528 = vmatpush3.msra.mxu0 %v310_v57  ;;  %v308_v1 = vld [vmem:[%s978_s5 + $0x60] sm:$0xff]  ;;  %v307_v5 = vld [vmem:[%s978_s5 + $0x58] sm:$0xff]  ;;  %v306_v9 = vld [vmem:[%s978_s5 + $0x50] sm:$0xff] }
  0x10   :  { %563 = vmatpush3.msra.mxu1 %v342_v58  ;;  %529 = vmatprep.subr.mxu0 %v325_v59  ;;  %v340_v2 = vld [vmem:[%s978_s5 + $0x160] sm:$0xff]  ;;  %v339_v6 = vld [vmem:[%s978_s5 + $0x158] sm:$0xff]  ;;  %v338_v10 = vld [vmem:[%s978_s5 + $0x150] sm:$0xff] }
  0x11   :  { %564 = vmatprep.subr.mxu1 %v357_v60  ;;  %530 = vmatpush3.msra.mxu0 %v309_v61  ;;  %v321_v11 = vld [vmem:[%s978_s5 + $0xc8] sm:$0xff]  ;;  %v320_v15 = vld [vmem:[%s978_s5 + $0xc0] sm:$0xff]  ;;  %v319_v19 = vld [vmem:[%s978_s5 + $0xb8] sm:$0xff] }
  0x12   :  { %565 = vmatpush3.msra.mxu1 %v341_v62  ;;  %531 = vmatprep.subr.mxu0 %v324_v63  ;;  %v353_v12 = vld [vmem:[%s978_s5 + $0x1c8] sm:$0xff]  ;;  %v352_v16 = vld [vmem:[%s978_s5 + $0x1c0] sm:$0xff]  ;;  %v351_v20 = vld [vmem:[%s978_s5 + $0x1b8] sm:$0xff] }
  0x13   :  { %566 = vmatprep.subr.mxu1 %v356_v0  ;;  %532 = vmatpush3.msra.mxu0 %v308_v1  ;;  %v305_v13 = vld [vmem:[%s978_s5 + $0x48] sm:$0xff]  ;;  %v304_v17 = vld [vmem:[%s978_s5 + $0x40] sm:$0xff]  ;;  %v303_v21 = vld [vmem:[%s978_s5 + $0x38] sm:$0xff] }
  0x14   :  { %567 = vmatpush3.msra.mxu1 %v340_v2  ;;  %533 = vmatprep.subr.mxu0 %v323_v3  ;;  %v337_v14 = vld [vmem:[%s978_s5 + $0x148] sm:$0xff]  ;;  %v336_v18 = vld [vmem:[%s978_s5 + $0x140] sm:$0xff]  ;;  %v335_v23 = vld [vmem:[%s978_s5 + $0x138] sm:$0xff] }
  0x15   :  { %568 = vmatprep.subr.mxu1 %v355_v4  ;;  %534 = vmatpush3.msra.mxu0 %v307_v5  ;;  %v297_v53 = vld [vmem:[%s978_s5 + $0x8] sm:$0xff]  ;;  %v312_v55 = vld [vmem:[%s978_s5 + $0x80] sm:$0xff] }
  0x16   :  { %569 = vmatpush3.msra.mxu1 %v339_v6  ;;  %535 = vmatprep.subr.mxu0 %v322_v7  ;;  %v329_v54 = vld [vmem:[%s978_s5 + $0x108] sm:$0xff]  ;;  %v344_v56 = vld [vmem:[%s978_s5 + $0x180] sm:$0xff] }
  0x17   :  { %570 = vmatprep.subr.mxu1 %v354_v8  ;;  %536 = vmatpush3.msra.mxu0 %v306_v9  ;;  %v296_v57 = vld [vmem:[%s978_s5] sm:$0xff] }
  0x18   :  { %571 = vmatpush3.msra.mxu1 %v338_v10  ;;  %537 = vmatprep.subr.mxu0 %v321_v11  ;;  %v328_v58 = vld [vmem:[%s978_s5 + $0x100] sm:$0xff] }
  0x19   :  { %572 = vmatprep.subr.mxu1 %v353_v12  ;;  %538 = vmatpush3.msra.mxu0 %v305_v13  ;;  %v244_v2 = vld [vmem:[%s976_s3] sm:$0xf] }
  0x1a   :  { %573 = vmatpush3.msra.mxu1 %v337_v14  ;;  %539 = vmatprep.subr.mxu0 %v320_v15  ;;  %v270_v3 = vld [vmem:[%s977_s4] sm:$0xf]  ;;  %v253_v4 = vrot.slane %v244_v2, %v733_v24  ;;  %v261_v5 = vrot.slane %v244_v2, %v738_v27  ;;  %v249_v6 = vrot.slane %v244_v2, %v728_v22 }
  0x1b   :  { %574 = vmatprep.subr.mxu1 %v352_v16  ;;  %540 = vmatpush3.msra.mxu0 %v304_v17  ;;  %v257_v7 = vrot.slane %v244_v2, %v735_v25  ;;  %v279_v13 = vrot.slane %v270_v3, %v733_v24  ;;  %v287_v14 = vrot.slane %v270_v3, %v738_v27 }
  0x1c   :  { %575 = vmatpush3.msra.mxu1 %v336_v18  ;;  %541 = vmatprep.subr.mxu0 %v319_v19  ;;  %v275_v15 = vrot.slane %v270_v3, %v728_v22  ;;  %v283_v16 = vrot.slane %v270_v3, %v735_v25  ;;  %v524_v25 = vld [vmem:[%s979_s6] ss:$0 sm:$0xff] }
  0x1d   :  { %576 = vmatprep.subr.mxu1 %v351_v20  ;;  %542 = vmatpush3.msra.mxu0 %v303_v21 }
  0x1e   :  { %577 = vmatpush3.msra.mxu1 %v335_v23 }
  0xca   :  { %v136_v30 = vpop.f32.mrf.mxu0 }
  0xcb   :  { %v137_v31 = vadd.f32 %v136_v30, %v49_v26  ;;  %v318_v26 = vld [vmem:[%s978_s5 + $0xb0] sm:$0xff] }
  0xcc   :  { %v138_v33 = vpop.f32.mrf.mxu0  ;;  %v207_v34 = vpop.f32.mrf.mxu1  ;;  %v334_v30 = vld [vmem:[%s978_s5 + $0x130] sm:$0xff]  ;;  %543 = vmatprep.subr.mxu0 %v318_v26 }
  0xcd   :  { %597 = vtanh.f32 %v137_v31  ;;  %v139_v35 = vadd.f32 %v138_v33, %v53_v28  ;;  %v208_v36 = vadd.f32 %v207_v34, %v57_v29  ;;  %v350_v28 = vld [vmem:[%s978_s5 + $0x1b0] sm:$0xff]  ;;  %v317_v31 = vld [vmem:[%s978_s5 + $0xa8] sm:$0xff] }
  0xce   :  { %v209_v37 = vpop.f32.mrf.mxu1  ;;  %v302_v29 = vld [vmem:[%s978_s5 + $0x30] sm:$0xff]  ;;  %578 = vmatprep.subr.mxu1 %v350_v28  ;;  %v301_v33 = vld [vmem:[%s978_s5 + $0x28] sm:$0xff] }
  0xcf   :  { %599 = vtanh.f32 %v139_v35  ;;  %v210_v38 = vadd.f32 %v209_v37, %v61_v32  ;;  %v349_v32 = vld [vmem:[%s978_s5 + $0x1a8] sm:$0xff]  ;;  %544 = vmatpush3.msra.mxu0 %v302_v29  ;;  %579 = vmatpush3.msra.mxu1 %v334_v30  ;;  %v316_v35 = vld [vmem:[%s978_s5 + $0xa0] sm:$0xff] }
  0xd0   :  { %601 = vtanh.f32 %v208_v36  ;;  %v333_v34 = vld [vmem:[%s978_s5 + $0x128] sm:$0xff]  ;;  %v348_v36 = vld [vmem:[%s978_s5 + $0x1a0] sm:$0xff]  ;;  %545 = vmatprep.subr.mxu0 %v317_v31  ;;  %580 = vmatprep.subr.mxu1 %v349_v32 }
  0xd1   :  { %603 = vtanh.f32 %v210_v38  ;;  %v300_v37 = vld [vmem:[%s978_s5 + $0x20] sm:$0xff]  ;;  %546 = vmatpush3.msra.mxu0 %v301_v33  ;;  %581 = vmatpush3.msra.mxu1 %v333_v34 }
  0xd2   :  { %v332_v38 = vld [vmem:[%s978_s5 + $0x120] sm:$0xff]  ;;  %547 = vmatprep.subr.mxu0 %v316_v35  ;;  %582 = vmatprep.subr.mxu1 %v348_v36 }
  0xd3   :  { %548 = vmatpush3.msra.mxu0 %v300_v37  ;;  %583 = vmatpush3.msra.mxu1 %v332_v38 }
  0xda   :  { %v743_v39 = vpop.eup %597 }
  0xdb   :  { %v222_v43 = vmul.f32 %v743_v39, %v743_v39 }
  0xdc   :  { %v745_v40 = vpop.eup %599 }
  0xdd   :  { %v747_v41 = vpop.eup %601  ;;  %v216_v42 = vadd.f32 %v745_v40, %v743_v39  ;;  %v223_v44 = vmul.f32 %v745_v40, %v745_v40 }
  0xde   :  { %v224_v45 = vmul.f32 %v747_v41, %v747_v41  ;;  %v758_v48 = vpop.eup %603 }
  0xdf   :  { %v217_v46 = vadd.f32 %v747_v41, %v216_v42  ;;  %v226_v47 = vadd.f32 %v223_v44, %v222_v43  ;;  %v225_v51 = vmul.f32 %v758_v48, %v758_v48  ;;  %v315_v42 = vld [vmem:[%s978_s5 + $0x98] sm:$0xff] }
  0xe0   :  { %v347_v43 = vld [vmem:[%s978_s5 + $0x198] sm:$0xff]  ;;  %549 = vmatprep.subr.mxu0 %v315_v42 }
  0xe1   :  { %v218_v49 = vadd.f32 %v758_v48, %v217_v46  ;;  %v227_v50 = vadd.f32 %v226_v47, %v224_v45  ;;  %v299_v44 = vld [vmem:[%s978_s5 + $0x18] sm:$0xff]  ;;  %v314_v46 = vld [vmem:[%s978_s5 + $0x90] sm:$0xff]  ;;  %584 = vmatprep.subr.mxu1 %v347_v43 }
  0xe2   :  { %v331_v45 = vld [vmem:[%s978_s5 + $0x118] sm:$0xff]  ;;  %v346_v47 = vld [vmem:[%s978_s5 + $0x190] sm:$0xff]  ;;  %550 = vmatpush3.msra.mxu0 %v299_v44 }
  0xe3   :  { %219 = vadd.xlane.f32.xlu0 %v218_v49  ;;  %v228_v52 = vadd.f32 %v227_v50, %v225_v51  ;;  %v298_v49 = vld [vmem:[%s978_s5 + $0x10] sm:$0xff]  ;;  %585 = vmatpush3.msra.mxu1 %v331_v45  ;;  %v313_v51 = vld [vmem:[%s978_s5 + $0x88] sm:$0xff] }
  0xe4   :  { %v330_v50 = vld [vmem:[%s978_s5 + $0x110] sm:$0xff]  ;;  %551 = vmatprep.subr.mxu0 %v314_v46  ;;  %586 = vmatprep.subr.mxu1 %v346_v47 }
  0xe5   :  { %552 = vmatpush3.msra.mxu0 %v298_v49  ;;  %587 = vmatpush3.msra.mxu1 %v330_v50 }
  0xe6   :  { %553 = vmatprep.subr.mxu0 %v313_v51 }
  0xe7   :  { %229 = vadd.xlane.f32.xlu0 %v228_v52  ;;  %v345_v52 = vld [vmem:[%s978_s5 + $0x188] sm:$0xff]  ;;  %554 = vmatpush3.msra.mxu0 %v297_v53  ;;  %s630_s5 = smov [#allocation2]  }
  0xe8   :  { %588 = vmatprep.subr.mxu1 %v345_v52  ;;  %555 = vmatprep.subr.mxu0 %v312_v55  ;;  %s514_s1 = sshll.u32 %s630_s5, 4  ;;  %s515_s1 = int_to_ptr.vmem [resolvable:$true] %s514_s1 }
  0xe9   :  { %589 = vmatpush3.msra.mxu1 %v329_v54  ;;  %556 = vmatpush3.msra.mxu0 %v296_v57  ;;  %s607_s15 = scalar_lea.vmem %s515_s1, 128  ;;  %p612_p1 = scmp.lt.s32.totalorder %s515_s1, %s515_s1 }
  0xea   :  { %590 = vmatprep.subr.mxu1 %v344_v56  ;;  %p608_p0 = scmp.ne.s32.totalorder %s515_s1, %s607_s15  ;;  %p613_p2 = scmp.lt.s32.totalorder %s607_s15, %s607_s15 }
  0xeb   :  { %591 = vmatpush3.msra.mxu1 %v328_v58 }
  0xec   :  { %p614_p3 = por %p613_p2, %p612_p1 }
  0xee   :  { %p615_p4 = pnand %p614_p3, %p608_p0 }
 0x16c   :  { %v220_v59 = vpop.xlane.xlu0 %219 }
 0x16d   :  { %v221_v60 = vmul.f32 0.001953125, %v220_v59 }
 0x16f   :  { %v232_v62 = vmul.f32 %v221_v60, %v221_v60  ;;  %v234_v8 = vsub.f32 %v743_v39, %v221_v60  ;;  %v236_v9 = vsub.f32 %v747_v41, %v221_v60  ;;  %v235_v10 = vsub.f32 %v745_v40, %v221_v60 }
 0x170   :  { %v230_v61 = vpop.xlane.xlu0 %229  ;;  %v237_v11 = vsub.f32 %v758_v48, %v221_v60 }
 0x171   :  { %v231_v63 = vmul.f32 0.001953125, %v230_v61 }
 0x173   :  { %v233_v0 = vsub.f32 %v231_v63, %v232_v62 }
 0x175   :  { %v238_v1 = vadd.f32 1e-05, %v233_v0 }
 0x177   :  { %605 = vrsqrt.f32 %v238_v1 }
 0x184   :  { %v606_v12 = vpop.eup %605 }
 0x185   :  { %v241_v17 = vmul.f32 %v606_v12, %v235_v10  ;;  %v243_v18 = vmul.f32 %v606_v12, %v237_v11  ;;  %v240_v19 = vmul.f32 %v606_v12, %v234_v8  ;;  %v242_v20 = vmul.f32 %v606_v12, %v236_v9 }
 0x187   :  { %v267_v39 = vmul.f32 %v253_v4, %v241_v17  ;;  %v269_v21 = vmul.f32 %v261_v5, %v243_v18  ;;  %v266_v41 = vmul.f32 %v249_v6, %v240_v19  ;;  %v268_v23 = vmul.f32 %v257_v7, %v242_v20 }
 0x189   :  { %v293_v40 = vadd.f32 %v279_v13, %v267_v39  ;;  %v295_v26 = vadd.f32 %v287_v14, %v269_v21  ;;  %v292_v48 = vadd.f32 %v275_v15, %v266_v41  ;;  %v294_v28 = vadd.f32 %v283_v16, %v268_v23 }
 0x18b   :  { %431 = vmatprep.mubr.f32.mxu0 %v293_v40  ;;  %501 = vmatprep.mubr.f32.mxu1 %v295_v26 }
 0x18c   :  { %432 = vmatmul.mubr.f32.vlgmr.msra.gmra.mxu0 %v292_v48  ;;  %502 = vmatmul.mubr.f32.vlgmr.msra.gmra.mxu1 %v294_v28 }
 0x24c   :  { %v557_v24 = vpop.f32.mrf.mxu0  ;;  %v592_v22 = vpop.f32.mrf.mxu1 }
 0x24e   :  { %v558_v27 = vpop.f32.mrf.mxu0  ;;  %v593_v29 = vpop.f32.mrf.mxu1 }
 0x24f   :  { %v559_v30 = vadd.f32 %v558_v27, %v557_v24  ;;  %v594_v32 = vadd.f32 %v593_v29, %v592_v22 }
 0x251   :  { %v434_v31 = vadd.f32 %v559_v30, %v524_v25 }
 0x253   :  { %v504_v33 = vadd.f32 %v594_v32, %v434_v31 }
 0x255   :  { %507 = vst [vmem:[#allocation2] sm:$0xff] %v504_v33 }
 0x256   :  { %618 = shalt.err (!%p615_p4)
}
 0x257   :  { %517 = dma.vmem_to_hbm [thread:$0]  %s515_s1, 128, %s980_s7, [#allocation3]  }
 0x258   :  { %627 = dma.done.wait [#allocation3], 128  }
 0x259   :  { %628 = vsyncadd [#allocation3], 4294967168 }
 0x25a   :  { %521 = vsyncpa [#allocation3], 1 }

</bundles_post_ra>
